<compile_context>
chip_gen: v6e
topology: v6e:2x2x1
jax: 0.10.0
libtpu: 0.0.40
codegen_flags: <defaults>
</compile_context>

<pallas_src>
import functools

import jax
import jax.numpy as jnp
from jax.experimental import pallas as pl
from jax.experimental.pallas import tpu as pltpu

LANES = 128          # TPU vreg lane count -> lane-dense packed slab width
_SMALL_B_MAX = 1024  # grid-free / pad-free single-block path up to this batch
_TB_MAX = 1024       # rows per block on the large-batch grid path


def _generator_kernel(r_ref, wb_ref, out_ref):
    # r_ref:   (TB, 1)      per-sample scalar regression target
    # wb_ref:  (2, LANES)   row 0 = packed weights, row 1 = packed biases
    #                       columns: [0,L) mean head | L logvar head | zeros
    # out_ref: (TB, LANES)  packed [mean | logvar | zeros]
    # in_features == 1  ==>  y = r @ W^T + b is a broadcasted mul-add (VPU).
    # Compute stays f32 (v5e VPU has no bf16 ALU); only the store may narrow.
    w = wb_ref[0:1, :]
    b = wb_ref[1:2, :]
    out_ref[...] = (r_ref[...] * w + b).astype(out_ref.dtype)


def pack_params(w_mean, b_mean, w_logvar, b_logvar):
    """One-time packing of PyTorch-layout params into one lane-dense tile.

    w_mean: (L, 1), b_mean: (L,), w_logvar: (1, 1), b_logvar: (1,)
    Returns wb of shape (2, LANES) float32:
      row 0 = weights, row 1 = biases;
      column layout: [0, L) -> mean head, L -> logvar head, rest -> zeros.
    """
    L = w_mean.shape[0]
    assert L + 1 <= LANES, "latent_dim + 1 must fit in one 128-lane tile"
    wb = jnp.zeros((2, LANES), jnp.float32)
    wb = wb.at[0, :L].set(w_mean.reshape(L).astype(jnp.float32))
    wb = wb.at[0, L].set(w_logvar.reshape(()).astype(jnp.float32))
    wb = wb.at[1, :L].set(b_mean.reshape(L).astype(jnp.float32))
    wb = wb.at[1, L].set(b_logvar.reshape(()).astype(jnp.float32))
    return wb


@functools.partial(jax.jit, static_argnames=("latent_dim", "out_dtype"))
def generator_forward(r, wb, *, latent_dim, out_dtype=jnp.float32):
    """r: (B, 1) float32; wb: (2, LANES) packed tile from pack_params."""
    L = latent_dim
    # Cheap static validation against the packing (perf-review correctness note).
    assert L + 1 <= LANES, "latent_dim + 1 must fit in one 128-lane tile"
    assert wb.shape == (2, LANES), "wb must come from pack_params"

    B = r.shape[0]
    r = r.astype(jnp.float32).reshape(B, 1)

    if B <= _SMALL_B_MAX:
        # --- Small-batch path (real module shape, B=8): no pad, no grid. ---
        # Whole arrays live in VMEM; single invocation, single lane-dense vst.
        slab = pl.pallas_call(
            _generator_kernel,
            out_shape=jax.ShapeDtypeStruct((B, LANES), out_dtype),
            in_specs=[
                pl.BlockSpec(memory_space=pltpu.MemorySpace.VMEM),  # r
                pl.BlockSpec(memory_space=pltpu.MemorySpace.VMEM),  # wb
            ],
            out_specs=pl.BlockSpec(memory_space=pltpu.MemorySpace.VMEM),
        )(r, wb)
    else:
        # --- Large-batch path: 1-D batch grid, pipelined writeback. ---
        B_pad8 = pl.cdiv(B, 8) * 8
        TB = min(B_pad8, _TB_MAX)
        B_pad = pl.cdiv(B_pad8, TB) * TB
        if B_pad != B:
            r = jnp.pad(r, ((0, B_pad - B), (0, 0)))

        slab = pl.pallas_call(
            _generator_kernel,
            out_shape=jax.ShapeDtypeStruct((B_pad, LANES), out_dtype),
            grid=(B_pad // TB,),
            in_specs=[
                pl.BlockSpec((TB, 1), lambda i: (i, 0)),        # r tile
                pl.BlockSpec((2, LANES), lambda i: (0, 0)),     # packed w+b
            ],
            out_specs=pl.BlockSpec((TB, LANES), lambda i: (i, 0)),
            compiler_params=pltpu.CompilerParams(
                dimension_semantics=("parallel",),  # >=2 steps here -> shards v7x TCs
            ),
        )(r, wb)

    # Plain-JAX plumbing: split the lane-dense slab back into the two heads.
    # TODO(synk): downstream consumers should read the packed slab directly to
    # avoid these slices and the slab's write amplification at large B.
    pz_mean = slab[:B, :L]
    pz_log_var = slab[:B, L:L + 1]
    return pz_mean, pz_log_var


def init_params(key, latent_dim=16):
    """Deterministic init matching nn.Linear shapes (Kaiming-uniform-ish)."""
    k1, k2, k3, k4 = jax.random.split(key, 4)
    bound = 1.0  # 1/sqrt(in_features) with in_features = 1
    w_mean = jax.random.uniform(k1, (latent_dim, 1), jnp.float32, -bound, bound)
    b_mean = jax.random.uniform(k2, (latent_dim,), jnp.float32, -bound, bound)
    w_logvar = jax.random.uniform(k3, (1, 1), jnp.float32, -bound, bound)
    b_logvar = jax.random.uniform(k4, (1,), jnp.float32, -bound, bound)
    return w_mean, b_mean, w_logvar, b_logvar


if __name__ == "__main__":
    key = jax.random.PRNGKey(0)
    k_params, k_small, k_large = jax.random.split(key, 3)

    latent_dim = 16
    batch = 8
    w_mean, b_mean, w_logvar, b_logvar = init_params(k_params, latent_dim)

    # One-time (init-time) packing — hoisted out of the per-call path.
    wb = pack_params(w_mean, b_mean, w_logvar, b_logvar)

    # --- Real module shape: B=8 scalar regression targets (grid-free path) ---
    r = jax.random.normal(k_small, (batch, 1), jnp.float32)
    pz_mean, pz_log_var = generator_forward(r, wb, latent_dim=latent_dim)
    jax.block_until_ready((pz_mean, pz_log_var))

    ref_mean = r @ w_mean.T + b_mean
    ref_logvar = r @ w_logvar.T + b_logvar
    assert pz_mean.shape == (batch, latent_dim)
    assert pz_log_var.shape == (batch, 1)
    assert jnp.allclose(pz_mean, ref_mean, atol=1e-5)
    assert jnp.allclose(pz_log_var, ref_logvar, atol=1e-5)

    # --- Exercise the large-batch grid path (padding + batch pipeline) ---
    r_big = jax.random.normal(k_large, (3000, 1), jnp.float32)
    mean_big, logvar_big = generator_forward(r_big, wb, latent_dim=latent_dim)
    jax.block_until_ready((mean_big, logvar_big))
    assert mean_big.shape == (3000, latent_dim)
    assert logvar_big.shape == (3000, 1)
    assert jnp.allclose(mean_big, r_big @ w_mean.T + b_mean, atol=1e-5)
    assert jnp.allclose(logvar_big, r_big @ w_logvar.T + b_logvar, atol=1e-5)

    print("KERNEL_OK")
</pallas_src>

<mosaic_0001>
module attributes {stable_mosaic.version = 11 : i64} {
  func.func @_generator_kernel(%arg0: memref<8x1xf32, #tpu.memory_space<vmem>>, %arg1: memref<2x128xf32, #tpu.memory_space<vmem>>, %arg2: memref<8x128xf32, #tpu.memory_space<vmem>>) attributes {dimension_semantics = [], scalar_prefetch = 0 : i64, scratch_operands = 0 : i64, tpu.core_type = #tpu.core_type<tc>} {
    %c0 = arith.constant 0 : index
    %c0_0 = arith.constant 0 : index
    %0 = vector.load %arg1[%c0, %c0_0] : memref<2x128xf32, #tpu.memory_space<vmem>>, vector<1x128xf32>
    %c1 = arith.constant 1 : index
    %c0_1 = arith.constant 0 : index
    %1 = vector.load %arg1[%c1, %c0_1] : memref<2x128xf32, #tpu.memory_space<vmem>>, vector<1x128xf32>
    %c0_2 = arith.constant 0 : index
    %c0_3 = arith.constant 0 : index
    %2 = vector.load %arg0[%c0_2, %c0_3] : memref<8x1xf32, #tpu.memory_space<vmem>>, vector<8x1xf32>
    %3 = vector.broadcast %2 : vector<8x1xf32> to vector<8x128xf32>
    %4 = vector.broadcast %0 : vector<1x128xf32> to vector<8x128xf32>
    %5 = arith.mulf %3, %4 : vector<8x128xf32>
    %6 = vector.broadcast %1 : vector<1x128xf32> to vector<8x128xf32>
    %7 = arith.addf %5, %6 : vector<8x128xf32>
    %c0_4 = arith.constant 0 : index
    %c0_5 = arith.constant 0 : index
    %8 = vector.load %arg2[%c0_4, %c0_5] : memref<8x128xf32, #tpu.memory_space<vmem>>, vector<8x128xf32>
    tpu.vector_store %arg2[%c0_4, %c0_5], %7 {strides = array<i32>} : memref<8x128xf32, #tpu.memory_space<vmem>>, vector<8x128xf32>,
    return
  }
}

</mosaic_0001>

<bundles_post_ra>
// kernel: generator_forward.1
= control target key start
LH: loop header
LB: loop body
LE: loop exit
PB: predicated region body
PF: predicated region fallthrough
CT: control target
= control target key end

     0   :  { %v38_v0 = vmov 0   ;;  %s66_s0 = inlined_call_operand.vmem [shape: f32[8,1], index: 0, kind: input, shape index: {}]   ;;  %s67_s1 = inlined_call_operand.vmem [shape: f32[2,128], index: 1, kind: input, shape index: {}]   ;;  %s68_s2 = inlined_call_operand.vmem [shape: f32[8,128], index: 2, kind: output, shape index: {}]  }
   0x1   :  { %37 = vset.pattern.permute.xlu0 %v38_v0  ;;  %v13_v1 = vld [vmem:[%s66_s0] sm:$0xff] }
   0x2   :  { %16 = vperm.xlu0 %37, %v13_v1   ;;  %v34_v2 = vld [vmem:[%s67_s1] ss:$0 sm:$0xff]  ;;  %v35_v3 = vld [vmem:[%s67_s1 + $0x1] ss:$0 sm:$0xff] }
  0x7d   :  { %v17_v4 = vpop.permute.xlu0 %16 }
  0x7e   :  { %v23_v5 = vmul.f32 %v34_v2, %v17_v4 }
  0x80   :  { %v28_v6 = vadd.f32 %v35_v3, %v23_v5 }
  0x82   :  { %29 = vst [vmem:[%s68_s2] sm:$0xff] %v28_v6 }

</bundles_post_ra>
